<compile_context>
chip_gen: v7x
topology: tpu7x:2x2x1
jax: 0.10.0
libtpu: 0.0.40
codegen_flags: <defaults>
</compile_context>

<pallas_src>
import functools
import math

import jax
import jax.numpy as jnp
from jax.experimental import pallas as pl
from jax.experimental.pallas import tpu as pltpu

EPS = 1e-12
MARGIN = 0.5
SCALE = 64.0
_COS_M = math.cos(MARGIN)
_SIN_M = math.sin(MARGIN)
# theta + m > pi - eps  <=>  cos_theta < cos(pi - m - eps)   (lower clamp unreachable for m > 0)
_UPPER_THRESH = math.cos(math.pi - MARGIN - EPS)
_COS_PI_EPS = math.cos(math.pi - EPS)
_NEG_BIG = -1e30  # finite "minus infinity" for masked (padded) class columns


def _round_up(x, m):
    return (x + m - 1) // m * m


def _pick_class_tile(C, E, bt, budget_bytes):
    """Largest lane-dense class tile whose double-buffered working set fits the budget."""
    cap = _round_up(min(C, 2048), 128)
    for tn in (2048, 1024, 512, 256, 128):
        if tn > cap:
            continue
        # 2x weight tile + 2x inv-norm tile + 2x logits tile + 2x resident emb + small refs
        work = 4 * (2 * tn * E + 2 * tn + 2 * bt * tn + 2 * bt * E + 8 * bt)
        if 2 * work <= budget_bytes:
            return tn
    return 128


def _angular_margin_kernel(emb_ref, w_ref, lbl_ref, inv_wn_ref,
                           logits_ref, ce_ref,
                           m_sc, l_sc, t_sc, inv_en_sc,
                           *, num_classes):
    j = pl.program_id(1)                       # class-tile index (innermost axis)
    n_ct = pl.num_programs(1)
    bt, tn = logits_ref.shape

    emb = emb_ref[...]                         # [bt, E] f32, resident across class tiles
    w = w_ref[...]                             # [tn, E] f32, current class tile

    @pl.when(j == 0)
    def _init():                               # per-batch-tile init (keyed on class axis!)
        m_sc[...] = jnp.full_like(m_sc, _NEG_BIG)
        l_sc[...] = jnp.zeros_like(l_sc)
        t_sc[...] = jnp.zeros_like(t_sc)
        # 1 / max(||emb_row||, eps) == rsqrt(max(||emb_row||^2, eps^2))
        inv_en_sc[...] = jax.lax.rsqrt(
            jnp.maximum(jnp.sum(emb * emb, axis=1, keepdims=True), EPS * EPS))

    # --- single MXU matmul per class tile: unnormalized logits -------------
    logits = jax.lax.dot_general(
        emb, w, (((1,), (1,)), ((), ())),
        preferred_element_type=jnp.float32)                       # [bt, tn]
    logits_ref[...] = logits

    # scaled cosine: (emb.w) * (1/||emb||) * (SCALE/||w||), clipped to +/-SCALE*(1-eps)
    cos_s = jnp.clip(logits * inv_en_sc[...] * inv_wn_ref[...],
                     -SCALE * (1.0 - EPS), SCALE * (1.0 - EPS))    # [bt, tn]

    # Target mask built in-kernel from the int32 label (no [B, C] one-hot)
    col = j * tn + jax.lax.broadcasted_iota(jnp.int32, (bt, tn), 1)
    tmask = col == lbl_ref[...]                                    # [bt, tn]
    col_valid = col < num_classes                                  # mask class padding

    # --- margin math only on the per-row target cosine ([bt, 1]) -----------
    target_cos = jnp.sum(jnp.where(tmask, cos_s, 0.0),
                         axis=1, keepdims=True) * (1.0 / SCALE)    # unscaled cos
    has_target = jnp.sum(tmask.astype(jnp.float32), axis=1, keepdims=True) > 0.0
    sin_t = jnp.sqrt(jnp.maximum(1.0 - target_cos * target_cos, 0.0))
    cos_tm = target_cos * _COS_M - sin_t * _SIN_M
    cos_tm = jnp.where(target_cos < _UPPER_THRESH, _COS_PI_EPS, cos_tm)
    t_val = cos_tm * SCALE                                         # [bt, 1]
    t_sc[...] = jnp.where(has_target, t_val, t_sc[...])

    full = jnp.where(tmask, t_val, cos_s)                          # scaled logits
    full = jnp.where(col_valid, full, _NEG_BIG)

    # --- online softmax accumulation across class tiles --------------------
    m_prev = m_sc[...]
    m_new = jnp.maximum(m_prev, jnp.max(full, axis=1, keepdims=True))
    alpha = jnp.exp(m_prev - m_new)
    l_sc[...] = alpha * l_sc[...] + jnp.sum(jnp.exp(full - m_new),
                                            axis=1, keepdims=True)
    m_sc[...] = m_new

    @pl.when(j == n_ct - 1)
    def _finalize():
        lse = m_sc[...] + jnp.log(l_sc[...])                       # [bt, 1]
        ce_ref[...] = t_sc[...] - lse                              # per-row target log-softmax


def angular_margin_loss(embedding_feature, weight, label):
    """Returns (logits [B, C] = emb @ W.T, scalar ArcFace cross-entropy loss)."""
    B, E = embedding_feature.shape
    C, E2 = weight.shape
    assert E == E2

    # Batch tile: MXU-row-friendly size when B is large, sublane-aligned otherwise.
    bt = 256 if B > 256 else _round_up(B, 8)
    Bp = _round_up(B, bt)
    n_bt = Bp // bt

    # VMEM budget: ~75% of per-core VMEM (headroom below 64 MiB on v7x, big on v5e/v6e).
    try:
        phys_vmem = int(pltpu.get_tpu_info().vmem_capacity_bytes)
    except Exception:
        phys_vmem = 64 * 1024 * 1024
    budget = (phys_vmem * 3) // 4

    tn = _pick_class_tile(C, E, bt, budget)
    Cp = _round_up(C, tn)
    n_ct = Cp // tn

    emb = embedding_feature.astype(jnp.float32)
    w = weight.astype(jnp.float32)
    lbl = label.astype(jnp.int32).reshape(B, 1)
    # Precompute SCALE / max(||w_c||, eps) in the wrapper (padded classes -> 0).
    inv_wn_s = (SCALE / jnp.maximum(jnp.sqrt(jnp.sum(w * w, axis=1)), EPS)).reshape(1, C)

    if Bp != B:
        emb = jnp.pad(emb, ((0, Bp - B), (0, 0)))
        lbl = jnp.pad(lbl, ((0, Bp - B), (0, 0)))
    if Cp != C:
        w = jnp.pad(w, ((0, Cp - C), (0, 0)))
        inv_wn_s = jnp.pad(inv_wn_s, ((0, 0), (0, Cp - C)))

    kernel = functools.partial(_angular_margin_kernel, num_classes=C)

    logits_p, ce = pl.pallas_call(
        kernel,
        grid=(n_bt, n_ct),
        in_specs=[
            pl.BlockSpec((bt, E), lambda i, j: (i, 0)),   # embeddings (resident over class tiles)
            pl.BlockSpec((tn, E), lambda i, j: (j, 0)),   # weight class tile
            pl.BlockSpec((bt, 1), lambda i, j: (i, 0)),   # int32 labels
            pl.BlockSpec((1, tn), lambda i, j: (0, j)),   # precomputed SCALE / ||w_c||
        ],
        out_specs=(
            pl.BlockSpec((bt, tn), lambda i, j: (i, j)),  # raw logits tile (lane-dense)
            pl.BlockSpec((bt, 1), lambda i, j: (i, 0)),   # per-row CE (reduced in wrapper)
        ),
        out_shape=(
            jax.ShapeDtypeStruct((Bp, Cp), jnp.float32),
            jax.ShapeDtypeStruct((Bp, 1), jnp.float32),
        ),
        scratch_shapes=[
            pltpu.VMEM((bt, 1), jnp.float32),             # running row max
            pltpu.VMEM((bt, 1), jnp.float32),             # running exp-sum
            pltpu.VMEM((bt, 1), jnp.float32),             # target (margin) logit
            pltpu.VMEM((bt, 1), jnp.float32),             # 1 / ||emb_row||
        ],
        compiler_params=pltpu.CompilerParams(
            dimension_semantics=("parallel", "arbitrary"),
            vmem_limit_bytes=int(budget),
        ),
        cost_estimate=pl.CostEstimate(
            flops=2 * Bp * Cp * E,
            transcendentals=Bp * Cp,
            bytes_accessed=4 * (Bp * E + n_bt * Cp * E + Cp + Bp * Cp + 2 * Bp),
        ),
    )(emb, w, lbl, inv_wn_s)

    loss = -jnp.mean(ce[:B, 0])
    return logits_p[:B, :C], loss


def _reference(embedding_feature, weight, label):
    """Plain-JAX reference mirroring the PyTorch forward (uses arccos)."""
    B = embedding_feature.shape[0]
    emb_n = embedding_feature / jnp.maximum(
        jnp.linalg.norm(embedding_feature, axis=1, keepdims=True), EPS)
    w_n = weight / jnp.maximum(
        jnp.linalg.norm(weight, axis=1, keepdims=True), EPS)
    cos_theta = jnp.clip(emb_n @ w_n.T, -1.0 + EPS, 1.0 - EPS)
    theta = jnp.arccos(cos_theta)
    rows = jnp.arange(B)
    theta_t = jnp.clip(theta[rows, label] + MARGIN, EPS, math.pi - EPS)
    theta = theta.at[rows, label].set(theta_t)
    scaled = jnp.cos(theta) * SCALE
    logp = jax.nn.log_softmax(scaled, axis=1)
    loss = -jnp.mean(logp[rows, label])
    logits = embedding_feature @ weight.T
    return logits, loss


if __name__ == "__main__":
    B, E, C = 8, 32, 16   # batch, embedding_size, num_classes

    key = jax.random.PRNGKey(0)
    k_emb, k_w, k_lbl = jax.random.split(key, 3)
    emb = jax.random.normal(k_emb, (B, E), dtype=jnp.float32)
    bound = 1.0 / math.sqrt(E)   # nn.Linear(E, C, bias=False)-style init
    weight = jax.random.uniform(k_w, (C, E), minval=-bound, maxval=bound,
                                dtype=jnp.float32)
    label = jax.random.randint(k_lbl, (B,), 0, C, dtype=jnp.int32)

    logits, loss = angular_margin_loss(emb, weight, label)
    jax.block_until_ready((logits, loss))

    ref_logits, ref_loss = _reference(emb, weight, label)
    assert jnp.allclose(logits, ref_logits, atol=1e-3, rtol=1e-3)
    assert jnp.allclose(loss, ref_loss, atol=2e-3, rtol=2e-3)

    print("KERNEL_OK")
</pallas_src>

<mosaic_0001>
module attributes {stable_mosaic.version = 11 : i64} {
  func.func @_angular_margin_kernel(%arg0: i32, %arg1: i32, %arg2: memref<8x32xf32, #tpu.memory_space<vmem>>, %arg3: memref<128x32xf32, #tpu.memory_space<vmem>>, %arg4: memref<8x1xi32, #tpu.memory_space<vmem>>, %arg5: memref<1x128xf32, #tpu.memory_space<vmem>>, %arg6: memref<8x128xf32, #tpu.memory_space<vmem>>, %arg7: memref<8x1xf32, #tpu.memory_space<vmem>>, %arg8: memref<8x1xf32, #tpu.memory_space<vmem>>, %arg9: memref<8x1xf32, #tpu.memory_space<vmem>>, %arg10: memref<8x1xf32, #tpu.memory_space<vmem>>, %arg11: memref<8x1xf32, #tpu.memory_space<vmem>>) attributes {dimension_semantics = [#tpu.dimension_semantics<parallel>, #tpu.dimension_semantics<arbitrary>], iteration_bounds = array<i64: 1, 1>, scalar_prefetch = 0 : i64, scratch_operands = 4 : i64, tpu.core_type = #tpu.core_type<tc>, window_params = [{transform_indices = @transform_0, window_bounds = array<i64: 8, 32>}, {transform_indices = @transform_1, window_bounds = array<i64: 128, 32>}, {transform_indices = @transform_2, window_bounds = array<i64: 8, 1>}, {transform_indices = @transform_3, window_bounds = array<i64: 1, 128>}, {transform_indices = @transform_4, window_bounds = array<i64: 8, 128>}, {transform_indices = @transform_5, window_bounds = array<i64: 8, 1>}]} {
    %c0 = arith.constant 0 : index
    %c0_0 = arith.constant 0 : index
    %0 = vector.load %arg2[%c0, %c0_0] : memref<8x32xf32, #tpu.memory_space<vmem>>, vector<8x32xf32>
    %c0_1 = arith.constant 0 : index
    %c0_2 = arith.constant 0 : index
    %1 = vector.load %arg3[%c0_1, %c0_2] : memref<128x32xf32, #tpu.memory_space<vmem>>, vector<128x32xf32>
    %c0_i32 = arith.constant 0 : i32
    %2 = arith.cmpi eq, %arg1, %c0_i32 : i32
    %3 = arith.extui %2 : i1 to i32
    %c0_i32_3 = arith.constant 0 : i32
    %4 = arith.cmpi ne, %3, %c0_i32_3 : i32
    scf.if %4 {
      %cst_43 = arith.constant -1.000000e+30 : f32
      %82 = vector.broadcast %cst_43 : f32 to vector<8x1xf32>
      %c0_44 = arith.constant 0 : index
      %c0_45 = arith.constant 0 : index
      %83 = vector.load %arg8[%c0_44, %c0_45] : memref<8x1xf32, #tpu.memory_space<vmem>>, vector<8x1xf32>
      tpu.vector_store %arg8[%c0_44, %c0_45], %82 {strides = array<i32>} : memref<8x1xf32, #tpu.memory_space<vmem>>, vector<8x1xf32>,
      %cst_46 = arith.constant 0.000000e+00 : f32
      %84 = vector.broadcast %cst_46 : f32 to vector<8x1xf32>
      %c0_47 = arith.constant 0 : index
      %c0_48 = arith.constant 0 : index
      %85 = vector.load %arg9[%c0_47, %c0_48] : memref<8x1xf32, #tpu.memory_space<vmem>>, vector<8x1xf32>
      tpu.vector_store %arg9[%c0_47, %c0_48], %84 {strides = array<i32>} : memref<8x1xf32, #tpu.memory_space<vmem>>, vector<8x1xf32>,
      %cst_49 = arith.constant 0.000000e+00 : f32
      %86 = vector.broadcast %cst_49 : f32 to vector<8x1xf32>
      %c0_50 = arith.constant 0 : index
      %c0_51 = arith.constant 0 : index
      %87 = vector.load %arg10[%c0_50, %c0_51] : memref<8x1xf32, #tpu.memory_space<vmem>>, vector<8x1xf32>
      tpu.vector_store %arg10[%c0_50, %c0_51], %86 {strides = array<i32>} : memref<8x1xf32, #tpu.memory_space<vmem>>, vector<8x1xf32>,
      %88 = arith.mulf %0, %0 : vector<8x32xf32>
      %cst_52 = arith.constant dense<0.000000e+00> : vector<8xf32>
      %89 = vector.multi_reduction <add>, %88, %cst_52 [1] : vector<8x32xf32> to vector<8xf32>
      %90 = vector.shape_cast %89 : vector<8xf32> to vector<8x1xf32>
      %cst_53 = arith.constant 1.000000e-24 : f32
      %91 = vector.broadcast %cst_53 : f32 to vector<8x1xf32>
      %92 = arith.maximumf %90, %91 : vector<8x1xf32>
      %93 = math.rsqrt %92 : vector<8x1xf32>
      %c0_54 = arith.constant 0 : index
      %c0_55 = arith.constant 0 : index
      %94 = vector.load %arg11[%c0_54, %c0_55] : memref<8x1xf32, #tpu.memory_space<vmem>>, vector<8x1xf32>
      tpu.vector_store %arg11[%c0_54, %c0_55], %93 {strides = array<i32>} : memref<8x1xf32, #tpu.memory_space<vmem>>, vector<8x1xf32>,
    } else {
    }
    %cst = arith.constant dense<0.000000e+00> : vector<8x128xf32>
    %5 = tpu.matmul %0, %1, %cst {dimension_numbers = #tpu.dot_dimension_numbers<[1], [1], [0], [0], [0, 0, 1, 0], [], []>} : vector<8x32xf32>, vector<128x32xf32>, vector<8x128xf32> -> vector<8x128xf32>
    %c0_4 = arith.constant 0 : index
    %c0_5 = arith.constant 0 : index
    %6 = vector.load %arg6[%c0_4, %c0_5] : memref<8x128xf32, #tpu.memory_space<vmem>>, vector<8x128xf32>
    tpu.vector_store %arg6[%c0_4, %c0_5], %5 {strides = array<i32>} : memref<8x128xf32, #tpu.memory_space<vmem>>, vector<8x128xf32>,
    %c0_6 = arith.constant 0 : index
    %c0_7 = arith.constant 0 : index
    %7 = vector.load %arg11[%c0_6, %c0_7] : memref<8x1xf32, #tpu.memory_space<vmem>>, vector<8x1xf32>
    %8 = vector.broadcast %7 : vector<8x1xf32> to vector<8x128xf32>
    %9 = arith.mulf %5, %8 : vector<8x128xf32>
    %c0_8 = arith.constant 0 : index
    %c0_9 = arith.constant 0 : index
    %10 = vector.load %arg5[%c0_8, %c0_9] : memref<1x128xf32, #tpu.memory_space<vmem>>, vector<1x128xf32>
    %11 = vector.broadcast %10 : vector<1x128xf32> to vector<8x128xf32>
    %12 = arith.mulf %9, %11 : vector<8x128xf32>
    %cst_10 = arith.constant -6.400000e+01 : f32
    %cst_11 = arith.constant 6.400000e+01 : f32
    %13 = vector.broadcast %cst_10 : f32 to vector<8x128xf32>
    %14 = arith.maximumf %13, %12 : vector<8x128xf32>
    %15 = vector.broadcast %cst_11 : f32 to vector<8x128xf32>
    %16 = arith.minimumf %15, %14 : vector<8x128xf32>
    %c128_i32 = arith.constant 128 : i32
    %17 = arith.muli %arg1, %c128_i32 : i32
    %18 = tpu.iota {dimensions = array<i32: 1>} : vector<8x128xi32>
    %19 = vector.broadcast %17 : i32 to vector<8x128xi32>
    %20 = arith.addi %19, %18 : vector<8x128xi32>
    %c0_12 = arith.constant 0 : index
    %c0_13 = arith.constant 0 : index
    %21 = vector.load %arg4[%c0_12, %c0_13] : memref<8x1xi32, #tpu.memory_space<vmem>>, vector<8x1xi32>
    %22 = vector.broadcast %21 : vector<8x1xi32> to vector<8x128xi32>
    %23 = arith.cmpi eq, %20, %22 : vector<8x128xi32>
    %c16_i32 = arith.constant 16 : i32
    %24 = vector.broadcast %c16_i32 : i32 to vector<8x128xi32>
    %25 = arith.cmpi slt, %20, %24 : vector<8x128xi32>
    %cst_14 = arith.constant 0.000000e+00 : f32
    %26 = vector.broadcast %cst_14 : f32 to vector<8x128xf32>
    %27 = arith.select %23, %16, %26 : vector<8x128xi1>, vector<8x128xf32>
    %cst_15 = arith.constant dense<0.000000e+00> : vector<8xf32>
    %28 = vector.multi_reduction <add>, %27, %cst_15 [1] : vector<8x128xf32> to vector<8xf32>
    %29 = vector.shape_cast %28 : vector<8xf32> to vector<8x1xf32>
    %cst_16 = arith.constant 1.562500e-02 : f32
    %30 = vector.broadcast %cst_16 : f32 to vector<8x1xf32>
    %31 = arith.mulf %29, %30 : vector<8x1xf32>
    %32 = arith.extui %23 : vector<8x128xi1> to vector<8x128xi32>
    %33 = arith.sitofp %32 : vector<8x128xi32> to vector<8x128xf32>
    %cst_17 = arith.constant dense<0.000000e+00> : vector<8xf32>
    %34 = vector.multi_reduction <add>, %33, %cst_17 [1] : vector<8x128xf32> to vector<8xf32>
    %35 = vector.shape_cast %34 : vector<8xf32> to vector<8x1xf32>
    %cst_18 = arith.constant 0.000000e+00 : f32
    %36 = vector.broadcast %cst_18 : f32 to vector<8x1xf32>
    %37 = arith.cmpf ogt, %35, %36 : vector<8x1xf32>
    %38 = arith.mulf %31, %31 : vector<8x1xf32>
    %cst_19 = arith.constant 1.000000e+00 : f32
    %39 = vector.broadcast %cst_19 : f32 to vector<8x1xf32>
    %40 = arith.subf %39, %38 : vector<8x1xf32>
    %cst_20 = arith.constant 0.000000e+00 : f32
    %41 = vector.broadcast %cst_20 : f32 to vector<8x1xf32>
    %42 = arith.maximumf %40, %41 : vector<8x1xf32>
    %43 = math.sqrt %42 : vector<8x1xf32>
    %cst_21 = arith.constant 0.87758255 : f32
    %44 = vector.broadcast %cst_21 : f32 to vector<8x1xf32>
    %45 = arith.mulf %31, %44 : vector<8x1xf32>
    %cst_22 = arith.constant 0.47942555 : f32
    %46 = vector.broadcast %cst_22 : f32 to vector<8x1xf32>
    %47 = arith.mulf %43, %46 : vector<8x1xf32>
    %48 = arith.subf %45, %47 : vector<8x1xf32>
    %cst_23 = arith.constant -0.87758255 : f32
    %49 = vector.broadcast %cst_23 : f32 to vector<8x1xf32>
    %50 = arith.cmpf olt, %31, %49 : vector<8x1xf32>
    %cst_24 = arith.constant -1.000000e+00 : f32
    %51 = vector.broadcast %cst_24 : f32 to vector<8x1xf32>
    %52 = arith.select %50, %51, %48 : vector<8x1xi1>, vector<8x1xf32>
    %cst_25 = arith.constant 6.400000e+01 : f32
    %53 = vector.broadcast %cst_25 : f32 to vector<8x1xf32>
    %54 = arith.mulf %52, %53 : vector<8x1xf32>
    %c0_26 = arith.constant 0 : index
    %c0_27 = arith.constant 0 : index
    %55 = vector.load %arg10[%c0_26, %c0_27] : memref<8x1xf32, #tpu.memory_space<vmem>>, vector<8x1xf32>
    %56 = arith.select %37, %54, %55 : vector<8x1xi1>, vector<8x1xf32>
    %c0_28 = arith.constant 0 : index
    %c0_29 = arith.constant 0 : index
    %57 = vector.load %arg10[%c0_28, %c0_29] : memref<8x1xf32, #tpu.memory_space<vmem>>, vector<8x1xf32>
    tpu.vector_store %arg10[%c0_28, %c0_29], %56 {strides = array<i32>} : memref<8x1xf32, #tpu.memory_space<vmem>>, vector<8x1xf32>,
    %58 = vector.shape_cast %54 : vector<8x1xf32> to vector<8x1xf32>
    %59 = vector.broadcast %58 : vector<8x1xf32> to vector<8x128xf32>
    %60 = arith.select %23, %59, %16 : vector<8x128xi1>, vector<8x128xf32>
    %cst_30 = arith.constant -1.000000e+30 : f32
    %61 = vector.broadcast %cst_30 : f32 to vector<8x128xf32>
    %62 = arith.select %25, %60, %61 : vector<8x128xi1>, vector<8x128xf32>
    %c0_31 = arith.constant 0 : index
    %c0_32 = arith.constant 0 : index
    %63 = vector.load %arg8[%c0_31, %c0_32] : memref<8x1xf32, #tpu.memory_space<vmem>>, vector<8x1xf32>
    %cst_33 = arith.constant dense<0xFF800000> : vector<8xf32>
    %64 = vector.multi_reduction <maximumf>, %62, %cst_33 [1] : vector<8x128xf32> to vector<8xf32>
    %65 = vector.shape_cast %64 : vector<8xf32> to vector<8x1xf32>
    %66 = arith.maximumf %63, %65 : vector<8x1xf32>
    %67 = arith.subf %63, %66 : vector<8x1xf32>
    %68 = math.exp %67 : vector<8x1xf32>
    %c0_34 = arith.constant 0 : index
    %c0_35 = arith.constant 0 : index
    %69 = vector.load %arg9[%c0_34, %c0_35] : memref<8x1xf32, #tpu.memory_space<vmem>>, vector<8x1xf32>
    %70 = arith.mulf %68, %69 : vector<8x1xf32>
    %71 = vector.broadcast %66 : vector<8x1xf32> to vector<8x128xf32>
    %72 = arith.subf %62, %71 : vector<8x128xf32>
    %73 = math.exp %72 : vector<8x128xf32>
    %cst_36 = arith.constant dense<0.000000e+00> : vector<8xf32>
    %74 = vector.multi_reduction <add>, %73, %cst_36 [1] : vector<8x128xf32> to vector<8xf32>
    %75 = vector.shape_cast %74 : vector<8xf32> to vector<8x1xf32>
    %76 = arith.addf %70, %75 : vector<8x1xf32>
    %c0_37 = arith.constant 0 : index
    %c0_38 = arith.constant 0 : index
    %77 = vector.load %arg9[%c0_37, %c0_38] : memref<8x1xf32, #tpu.memory_space<vmem>>, vector<8x1xf32>
    tpu.vector_store %arg9[%c0_37, %c0_38], %76 {strides = array<i32>} : memref<8x1xf32, #tpu.memory_space<vmem>>, vector<8x1xf32>,
    %c0_39 = arith.constant 0 : index
    %c0_40 = arith.constant 0 : index
    %78 = vector.load %arg8[%c0_39, %c0_40] : memref<8x1xf32, #tpu.memory_space<vmem>>, vector<8x1xf32>
    tpu.vector_store %arg8[%c0_39, %c0_40], %66 {strides = array<i32>} : memref<8x1xf32, #tpu.memory_space<vmem>>, vector<8x1xf32>,
    %c0_i32_41 = arith.constant 0 : i32
    %79 = arith.cmpi eq, %arg1, %c0_i32_41 : i32
    %80 = arith.extui %79 : i1 to i32
    %c0_i32_42 = arith.constant 0 : i32
    %81 = arith.cmpi ne, %80, %c0_i32_42 : i32
    scf.if %81 {
      %c0_43 = arith.constant 0 : index
      %c0_44 = arith.constant 0 : index
      %82 = vector.load %arg8[%c0_43, %c0_44] : memref<8x1xf32, #tpu.memory_space<vmem>>, vector<8x1xf32>
      %c0_45 = arith.constant 0 : index
      %c0_46 = arith.constant 0 : index
      %83 = vector.load %arg9[%c0_45, %c0_46] : memref<8x1xf32, #tpu.memory_space<vmem>>, vector<8x1xf32>
      %84 = math.log %83 : vector<8x1xf32>
      %85 = arith.addf %82, %84 : vector<8x1xf32>
      %c0_47 = arith.constant 0 : index
      %c0_48 = arith.constant 0 : index
      %86 = vector.load %arg10[%c0_47, %c0_48] : memref<8x1xf32, #tpu.memory_space<vmem>>, vector<8x1xf32>
      %87 = arith.subf %86, %85 : vector<8x1xf32>
      %c0_49 = arith.constant 0 : index
      %c0_50 = arith.constant 0 : index
      %88 = vector.load %arg7[%c0_49, %c0_50] : memref<8x1xf32, #tpu.memory_space<vmem>>, vector<8x1xf32>
      tpu.vector_store %arg7[%c0_49, %c0_50], %87 {strides = array<i32>} : memref<8x1xf32, #tpu.memory_space<vmem>>, vector<8x1xf32>,
    } else {
    }
    return
  }
  func.func @transform_0(%arg0: i32, %arg1: i32) -> (i32, i32) {
    %c0_i32 = arith.constant 0 : i32
    %c0_i32_0 = arith.constant 0 : i32
    return %arg0, %c0_i32 : i32, i32
  }
  func.func @transform_1(%arg0: i32, %arg1: i32) -> (i32, i32) {
    %c0_i32 = arith.constant 0 : i32
    %c0_i32_0 = arith.constant 0 : i32
    return %arg1, %c0_i32 : i32, i32
  }
  func.func @transform_2(%arg0: i32, %arg1: i32) -> (i32, i32) {
    %c0_i32 = arith.constant 0 : i32
    %c0_i32_0 = arith.constant 0 : i32
    return %arg0, %c0_i32 : i32, i32
  }
  func.func @transform_3(%arg0: i32, %arg1: i32) -> (i32, i32) {
    %c0_i32 = arith.constant 0 : i32
    %c0_i32_0 = arith.constant 0 : i32
    return %c0_i32, %arg1 : i32, i32
  }
  func.func @transform_4(%arg0: i32, %arg1: i32) -> (i32, i32) {
    %c0_i32 = arith.constant 0 : i32
    return %arg0, %arg1 : i32, i32
  }
  func.func @transform_5(%arg0: i32, %arg1: i32) -> (i32, i32) {
    %c0_i32 = arith.constant 0 : i32
    %c0_i32_0 = arith.constant 0 : i32
    return %arg0, %c0_i32 : i32, i32
  }
}

</mosaic_0001>

<bundles_post_ra>
// kernel: tpu_custom_call.1
= control target key start
LH: loop header
LB: loop body
LE: loop exit
PB: predicated region body
PF: predicated region fallthrough
CT: control target
= control target key end

     0   :  { %vm46_vm0 = vcmask 261120   ;;  %vm41_vm1 = vcmask 7168   ;;  %v432_v5 = vmov 0.0|0.0   ;;  %v433_v7 = vmov 0.0   ;;  %s579_s0 = inlined_call_operand.vmem [shape: f32[8,32], index: 0, kind: input, shape index: {}]   ;;  %s580_s1 = inlined_call_operand.vmem [shape: f32[128,32], index: 1, kind: input, shape index: {}]   ;;  %s581_s2 = inlined_call_operand.vmem [shape: s32[8,1], index: 2, kind: input, shape index: {}]   ;;  %s582_s3 = inlined_call_operand.vmem [shape: f32[1,128], index: 3, kind: input, shape index: {}]   ;;  %s583_s4 = inlined_call_operand.hbm [shape: f32[8,128], index: 4, kind: output, shape index: {0}]   ;;  %s584_s5 = inlined_call_operand.vmem [shape: f32[8,1], index: 5, kind: output, shape index: {1}]  }
   0x1   :  { %v20_v0 = vld [vmem:[%s579_s0] sm:$0xff]  ;;  %v22_v2 = vld [vmem:[%s580_s1 + $0x8] sm:$0xff]  ;;  %vm479_vm2 = vmpackc.low %vm46_vm0, %vm46_vm0  ;;  %358 = vmatprep.subr.bf16.mxu0 %v432_v5  ;;  %43 = vst.msk [vmem:[#allocation3] sm:$0xff] %vm41_vm1, %v433_v7  ;;  %vm434_vm3 = vmmov 0  }
   0x2   :  { %v21_v1 = vld [vmem:[%s580_s1] sm:$0xff]  ;;  %v45_v3 = vmul.f32 %v20_v0, %v20_v0  ;;  %44 = vst.msk [vmem:[#allocation4] sm:$0xff] %vm41_vm1, %v433_v7  ;;  %355 = vmatprep.mubr.msk.f32.mxu0 %vm434_vm3, %v433_v7  ;;  %v23_v9 = vld [vmem:[%s580_s1 + $0x10] sm:$0xff]  ;;  %v24_v10 = vld [vmem:[%s580_s1 + $0x18] sm:$0xff] }
   0x3   :  { %v359_v6 = vpack.c.bf16 %v22_v2, %v21_v1 }
   0x4   :  { %v47_v8 = vsel %vm46_vm0, %v45_v3, 0.0 }
   0x5   :  { %361 = vmatpush3.bf16.xpose.msk.msra.mxu0 %vm479_vm2, %v359_v6  ;;  %48 = vadd.xlane.f32.xlu0 %v47_v8 }
   0x6   :  { %362 = vmatprep.subr.bf16.mxu0 %v432_v5 }
   0x7   :  { %11 = vsyncpa [#allocation7], 0  ;;  %v363_v11 = vpack.c.bf16 %v24_v10, %v23_v9  ;;  %v25_v12 = vld [vmem:[%s580_s1 + $0x20] sm:$0xff]  ;;  %v26_v13 = vld [vmem:[%s580_s1 + $0x28] sm:$0xff]  ;;  %v435_v21 = vmov 0   ;;  %v194_v38 = vlaneseq }
   0x8   :  { %v367_v14 = vpack.c.bf16 %v26_v13, %v25_v12  ;;  %v27_v15 = vld [vmem:[%s580_s1 + $0x30] sm:$0xff]  ;;  %v28_v16 = vld [vmem:[%s580_s1 + $0x38] sm:$0xff]  ;;  %v29_v18 = vld [vmem:[%s580_s1 + $0x40] sm:$0xff]  ;;  %396 = vset.pattern.permute.xlu0 %v435_v21  ;;  %397 = vset.pattern.permute.xlu1 %v435_v21  ;;  %v436_v47 = vmov -1e+30  }
   0x9   :  { %v371_v17 = vpack.c.bf16 %v28_v16, %v27_v15  ;;  %v30_v19 = vld [vmem:[%s580_s1 + $0x48] sm:$0xff]  ;;  %v31_v22 = vld [vmem:[%s580_s1 + $0x50] sm:$0xff]  ;;  %v32_v23 = vld [vmem:[%s580_s1 + $0x58] sm:$0xff]  ;;  %v195_v41 = vand.u32 127, %v194_v38  ;;  %42 = vst.msk [vmem:[#allocation2] sm:$0xff] %vm41_vm1, %v436_v47 }
   0xa   :  { %v375_v20 = vpack.c.bf16 %v30_v19, %v29_v18  ;;  %v379_v24 = vpack.c.bf16 %v32_v23, %v31_v22  ;;  %v198_v25 = vld [vmem:[%s581_s2] sm:$0xff]  ;;  %v34_v27 = vld [vmem:[%s580_s1 + $0x68] sm:$0xff]  ;;  %v35_v29 = vld [vmem:[%s580_s1 + $0x70] sm:$0xff] }
   0xb   :  { %200 = vperm.xlu1 %397, %v198_v25   ;;  %v33_v26 = vld [vmem:[%s580_s1 + $0x60] sm:$0xff]  ;;  %v36_v30 = vld [vmem:[%s580_s1 + $0x78] sm:$0xff]  ;;  %vm203_vm8 = vcmp.lt.s32.totalorder %v195_v41, 16 }
   0xc   :  { %v383_v28 = vpack.c.bf16 %v34_v27, %v33_v26  ;;  %v387_v31 = vpack.c.bf16 %v36_v30, %v35_v29  ;;  %v303_v39 = vld [vmem:[%s582_s3] ss:$0 sm:$0xff]  ;;  %s437_s3 = smov [#allocation6]  }
   0xd   :  { %365 = vmatpush3.bf16.xpose.msk.msra.mxu0 %vm479_vm2, %v363_v11  ;;  %v229_v11 = vld [vmem:[#allocation4] sm:$0xff]  ;;  %s274_s27 = sshll.u32 %s437_s3, 4  ;;  %s275_s27 = int_to_ptr.vmem [resolvable:$true] %s274_s27 }
   0xe   :  { %366 = vmatprep.subr.bf16.mxu0 %v432_v5  ;;  %s408_s28 = scalar_lea.vmem %s275_s27, 128  ;;  %p413_p1 = scmp.lt.s32.totalorder %s275_s27, %s275_s27 }
   0xf   :  { %p409_p0 = scmp.ne.s32.totalorder %s275_s27, %s408_s28  ;;  %p414_p2 = scmp.lt.s32.totalorder %s408_s28, %s408_s28 }
  0x10   :  { %v235_v1 = vld [vmem:[#allocation2] sm:$0xff] }
  0x11   :  { %p415_p3 = por %p414_p2, %p413_p1 }
  0x13   :  { %p416_p4 = pnand %p415_p3, %p409_p0 }
  0x15   :  { %369 = vmatpush3.bf16.xpose.msk.msra.mxu0 %vm479_vm2, %v367_v14 }
  0x16   :  { %370 = vmatprep.subr.bf16.mxu0 %v432_v5 }
  0x1d   :  { %373 = vmatpush3.bf16.xpose.msk.msra.mxu0 %vm479_vm2, %v371_v17 }
  0x1e   :  { %374 = vmatprep.subr.bf16.mxu0 %v432_v5 }
  0x25   :  { %377 = vmatpush3.bf16.xpose.msk.msra.mxu0 %vm479_vm2, %v375_v20 }
  0x26   :  { %378 = vmatprep.subr.bf16.mxu0 %v432_v5 }
  0x2d   :  { %381 = vmatpush3.bf16.xpose.msk.msra.mxu0 %vm479_vm2, %v379_v24 }
  0x2e   :  { %382 = vmatprep.subr.bf16.mxu0 %v432_v5 }
  0x35   :  { %385 = vmatpush3.bf16.xpose.msk.msra.mxu0 %vm479_vm2, %v383_v28 }
  0x36   :  { %386 = vmatprep.subr.bf16.mxu0 %v432_v5 }
  0x3d   :  { %389 = vmatpush3.bf16.xpose.msk.msra.mxu0 %vm479_vm2, %v387_v31 }
  0x44   :  { %356 = vmatmul.mubr.msk.f32.vlgmr.msra.gmra.mrb[0].mxu0 %vm46_vm0, %v20_v0 }
  0x8a   :  { %v201_v43 = vpop.permute.xlu1 %200 }
  0x8b   :  { %vm202_vm4 = vcmp.eq.s32.totalorder %v195_v41, %v201_v43 }
  0x8c   :  { %v305_v5 = vsel %vm202_vm4, 1.0, %v433_v7 }
  0x92   :  { %v49_v32 = vpop.xlane.xlu0 %48 }
  0x93   :  { %v50_v33 = vmax.f32 %v49_v32, 1e-24 }
  0x95   :  { %398 = vrsqrt.f32 %v50_v33 }
  0x9f   :  { %v399_v34 = vpop.eup %398 }
  0xa0   :  { %52 = vst.msk [vmem:[#allocation5] sm:$0xff] %vm41_vm1, %v399_v34 }
  0xa7   :  { %v176_v35 = vld [vmem:[#allocation5] sm:$0xff] }
  0xa8   :  { %179 = vperm.xlu0 %396, %v176_v35  }
 0x117   :  { %v171_v36 = vpop.f32.mrb[0].mxu0 }
 0x118   :  { %175 = vst [vmem:[#allocation6] sm:$0xff] %v171_v36  ;;  %v357_v37 = vpop.f32.mrb[1].mxu0 }
 0x127   :  { %v180_v40 = vpop.permute.xlu0 %179 }
 0x128   :  { %v182_v42 = vmul.f32 %v180_v40, %v171_v36 }
 0x12a   :  { %v190_v44 = vmul.f32 %v303_v39, %v182_v42 }
 0x12c   :  { %v304_v45 = vclamps-f32 %v190_v44, 64.0 }
 0x12e   :  { %v204_v46 = vsel %vm202_vm4, %v304_v45, 0.0 }
 0x12f   :  { %205 = vadd.xlane.f32.xlu1 %v204_v46 }
 0x1bc   :  { %v206_v48 = vpop.xlane.xlu1 %205 }
 0x1bd   :  { %v207_v49 = vmul.f32 0.015625, %v206_v48 }
 0x1bf   :  { %v213_v50 = vmul.f32 %v207_v49, %v207_v49  ;;  %v223_v58 = vmul.f32 0.87758255, %v207_v49  ;;  %vm226_vm7 = vcmp.lt.f32.partialorder %v207_v49, -0.87758255 }
 0x1c1   :  { %v214_v51 = vsub.f32 1.0, %v213_v50 }
 0x1c3   :  { %v215_v52 = vmax.f32 %v214_v51, 0.0 }
 0x1c5   :  { %400 = vrsqrt.f32 %v215_v52  ;;  %vm218_vm5 = vcmp.eq.f32.partialorder %v215_v52, inf  ;;  %v221_v55 = vand.u32 2147483648, %v215_v52  ;;  %vm220_vm6 = vcmp.eq.f32.partialorder %v215_v52, 0.0 }
 0x1cf   :  { %v401_v53 = vpop.eup %400 }
 0x1d0   :  { %v217_v54 = vmul.f32 %v401_v53, %v215_v52 }
 0x1d2   :  { %v219_v56 = vsel %vm218_vm5, %v215_v52, %v217_v54 }
 0x1d3   :  { %v222_v57 = vsel %vm220_vm6, %v221_v55, %v219_v56 }
 0x1d4   :  { %v224_v59 = vmul.f32 0.47942555, %v222_v57 }
 0x1d6   :  { %v225_v60 = vsub.f32 %v223_v58, %v224_v59 }
 0x1d8   :  { %v227_v61 = vsel %vm226_vm7, -1.0, %v225_v60 }
 0x1d9   :  { %v228_v62 = vmul.f32 64.0, %v227_v61 }
 0x1db   :  { %v233_v63 = vsel %vm202_vm4, %v228_v62, %v304_v45 }
 0x1dc   :  { %v234_v0 = vsel %vm203_vm8, %v233_v63, -1e+30 }
 0x1dd   :  { %236 = vmax.xlane.f32.xlu1 %v234_v0 }
 0x26a   :  { %v237_v2 = vpop.xlane.xlu1 %236 }
 0x26b   :  { %v238_v3 = vmax.f32 %v235_v1, %v237_v2 }
 0x26d   :  { %v239_v4 = vsub.f32 %v235_v1, %v238_v3  ;;  %256 = vst.msk [vmem:[#allocation2] sm:$0xff] %vm41_vm1, %v238_v3  ;;  %246 = vperm.xlu1 %397, %v238_v3  }
 0x291   :  { %210 = vadd.xlane.f32.xlu1 %v305_v5 }
 0x2ec   :  { %v247_v6 = vpop.permute.xlu1 %246 }
 0x2ed   :  { %v249_v8 = vsub.f32 %v234_v0, %v247_v6 }
 0x2ef   :  { %v250_v9 = vmul.f32 1.442695, %v249_v8 }
 0x2f1   :  { %402 = vpow2.f32 %v250_v9 }
 0x2fb   :  { %v403_v10 = vpop.eup %402 }
 0x2fc   :  { %252 = vadd.xlane.f32.xlu0 %v403_v10 }
 0x31e   :  { %v211_v12 = vpop.xlane.xlu1 %210 }
 0x31f   :  { %vm212_vm9 = vcmp.gt.f32.partialorder %v211_v12, 0.0 }
 0x320   :  { %v230_v13 = vsel %vm212_vm9, %v228_v62, %v229_v11 }
 0x321   :  { %232 = vst.msk [vmem:[#allocation4] sm:$0xff] %vm41_vm1, %v230_v13 }
 0x322   :  { %419 = shalt.err (!%p416_p4)
}
 0x323   :  { %s420_s6 = scalar_lea.hbm %s583_s4, 128 }
 0x324   :  { %p421_p5 = scmp.ne.s32.totalorder %s583_s4, %s420_s6  ;;  %p424_p6 = scmp.lt.u32.totalorder %s420_s6, %s583_s4 }
 0x326   :  { %p426_p7 = pnand %p424_p6, %p421_p5 }
 0x328   :  { %429 = shalt.err (!%p426_p7)
}
 0x329   :  { %277 = dma.vmem_to_hbm [thread:$0]  %s275_s27, 128, %s583_s4, [#allocation7]   ;;  %v240_v7 = vmul.f32 1.442695, %v239_v4  ;;  %v242_v15 = vld [vmem:[#allocation3] sm:$0xff]  ;;  %v260_v22 = vld [vmem:[#allocation2] sm:$0xff] }
 0x32a   :  { %v265_v24 = vld [vmem:[#allocation4] sm:$0xff] }
 0x32b   :  { %404 = vpow2.f32 %v240_v7 }
 0x335   :  { %v405_v14 = vpop.eup %404 }
 0x336   :  { %v243_v16 = vmul.f32 %v405_v14, %v242_v15 }
 0x389   :  { %v253_v17 = vpop.xlane.xlu0 %252 }
 0x38a   :  { %v254_v18 = vadd.f32 %v253_v17, %v243_v16 }
 0x38c   :  { %255 = vst.msk [vmem:[#allocation3] sm:$0xff] %vm41_vm1, %v254_v18 }
 0x393   :  { %v261_v19 = vld [vmem:[#allocation3] sm:$0xff] }
 0x394   :  { %406 = vlog2.f32 %v261_v19 }
 0x39e   :  { %v407_v20 = vpop.eup %406 }
 0x39f   :  { %v263_v21 = vmul.f32 0.6931472, %v407_v20 }
 0x3a1   :  { %v264_v23 = vadd.f32 %v263_v21, %v260_v22 }
 0x3a3   :  { %v266_v25 = vsub.f32 %v265_v24, %v264_v23 }
 0x3a5   :  { %267 = vst.msk [vmem:[%s584_s5] sm:$0xff] %vm41_vm1, %v266_v25 }
 0x3a6   :  { %430 = dma.done.wait [#allocation7], 128  }
 0x3a7   :  { %431 = vsyncadd [#allocation7], 4294967168 }
 0x3a8   :  { %285 = vsyncpa [#allocation7], 1 }

</bundles_post_ra>
